<compile_context>
chip_gen: v7x
topology: tpu7x:2x2x1
jax: 0.10.0
libtpu: 0.0.40
codegen_flags: <defaults>
</compile_context>

<pallas_src>
import functools

import jax
import jax.numpy as jnp
from jax.experimental import pallas as pl
from jax.experimental.pallas import tpu as pltpu

LANE = 128      # lane width: last-dim padding target
SUBLANE = 8     # f32 sublane width


def _round_up(x, m):
    return ((x + m - 1) // m) * m


def _pad2d(a, rows, cols):
    r, c = a.shape
    return jnp.pad(a, ((0, rows - r), (0, cols - c)))


# ----------------------------- fused Pallas kernel ---------------------------

def _fused_gcn_kernel(a_ref, p_ref, x_ref,
                      wpre_ref, bpre_ref,
                      w1_ref, b1_ref, w2_ref, b2_ref, w3_ref, b3_ref,
                      wcls_ref, bcls_ref,
                      o_ref):
    # Stage 0: pre-linear + ReLU (f32 matmul, f32 accumulate).
    h = jnp.dot(x_ref[...], wpre_ref[...], preferred_element_type=jnp.float32)
    h = jnp.maximum(h + bpre_ref[...], 0.0)

    # A_hat loaded once (bf16) and kept resident for all three GCN layers.
    a = a_ref[...]

    # Stages 1..3: fused GCNConv layers  relu(A_hat @ (h @ W_k) + b_k).
    # bf16 on the MXU inputs, f32 accumulation; bias/ReLU in f32 (v5e has no bf16 VPU).
    for w_ref, b_ref in ((w1_ref, b1_ref), (w2_ref, b2_ref), (w3_ref, b3_ref)):
        xw = jnp.dot(h.astype(jnp.bfloat16), w_ref[...],
                     preferred_element_type=jnp.float32)
        y = jnp.dot(a, xw.astype(jnp.bfloat16),
                    preferred_element_type=jnp.float32)
        h = jnp.maximum(y + b_ref[...], 0.0)

    # Tail, fused as well: out = (P @ h) @ W_cls + b_cls
    g = jnp.dot(p_ref[...], h, preferred_element_type=jnp.float32)
    out = jnp.dot(g, wcls_ref[...], preferred_element_type=jnp.float32)
    o_ref[...] = (out + bcls_ref[...]).astype(o_ref.dtype)


# ----------------------------- glue (plain JAX) ------------------------------

def build_normalized_adjacency(edge_index, num_nodes):
    """Dense A_hat = D^{-1/2} (A + I) D^{-1/2}, A_hat[dst, src] (PyG GCNConv norm)."""
    src, dst = edge_index[0], edge_index[1]
    a = jnp.zeros((num_nodes, num_nodes), jnp.float32)
    a = a.at[dst, src].set(1.0)
    a = a + jnp.eye(num_nodes, dtype=jnp.float32)  # add self-loops
    deg = jnp.sum(a, axis=1)
    dinv = jnp.where(deg > 0, 1.0 / jnp.sqrt(deg), 0.0)
    return dinv[:, None] * a * dinv[None, :]


def build_pool_matrix(batch, num_graphs, num_nodes):
    """P[g, n] = 1/|graph g| if batch[n] == g else 0  (global mean pool as matmul)."""
    del num_nodes
    onehot = (batch[None, :] == jnp.arange(num_graphs)[:, None]).astype(jnp.float32)
    counts = jnp.maximum(jnp.sum(onehot, axis=1, keepdims=True), 1.0)
    return onehot / counts


def init_params(key, in_feats, hidden, out_feats):
    """Deterministic synthetic parameters (Linear/GCNConv weight shapes)."""
    def lin(k, fan_in, fan_out):
        k1, k2 = jax.random.split(k)
        bound = 1.0 / jnp.sqrt(fan_in)
        w = jax.random.uniform(k1, (fan_in, fan_out), jnp.float32, -bound, bound)
        b = jax.random.uniform(k2, (fan_out,), jnp.float32, -bound, bound)
        return w, b

    keys = jax.random.split(key, 5)
    params = {}
    params["pre_w"], params["pre_b"] = lin(keys[0], in_feats, hidden)
    params["c1_w"], params["c1_b"] = lin(keys[1], hidden, hidden)
    params["c2_w"], params["c2_b"] = lin(keys[2], hidden, hidden)
    params["c3_w"], params["c3_b"] = lin(keys[3], hidden, hidden)
    params["cls_w"], params["cls_b"] = lin(keys[4], hidden, out_feats)
    return params


# ----------------------------- forward ---------------------------------------

def gcn_forward(params, x, edge_index, batch, num_graphs):
    n_nodes, in_feats = x.shape
    hidden = params["pre_w"].shape[1]
    out_feats = params["cls_w"].shape[1]

    # Padded (lane-dense / bf16-packable) dimensions.
    n_p = _round_up(n_nodes, LANE)       # node axis: lanes of A_hat + bf16 sublanes
    f_p = _round_up(in_feats, LANE)
    h_p = _round_up(hidden, LANE)
    o_p = _round_up(out_feats, LANE)
    g_p = _round_up(num_graphs, SUBLANE)

    a_hat = build_normalized_adjacency(edge_index, n_nodes)
    pool = build_pool_matrix(batch, num_graphs, n_nodes)

    # Zero-padding is numerically inert here: padded A_hat rows/cols are zero, padded
    # weight rows/cols and biases are zero, and P has zeros on padded node columns.
    a_pad = _pad2d(a_hat, n_p, n_p).astype(jnp.bfloat16)
    p_pad = _pad2d(pool, g_p, n_p)
    x_pad = _pad2d(x, n_p, f_p)

    wpre = _pad2d(params["pre_w"], f_p, h_p)
    bpre = jnp.pad(params["pre_b"], (0, h_p - hidden)).reshape(1, h_p)
    w1 = _pad2d(params["c1_w"], h_p, h_p).astype(jnp.bfloat16)
    b1 = jnp.pad(params["c1_b"], (0, h_p - hidden)).reshape(1, h_p)
    w2 = _pad2d(params["c2_w"], h_p, h_p).astype(jnp.bfloat16)
    b2 = jnp.pad(params["c2_b"], (0, h_p - hidden)).reshape(1, h_p)
    w3 = _pad2d(params["c3_w"], h_p, h_p).astype(jnp.bfloat16)
    b3 = jnp.pad(params["c3_b"], (0, h_p - hidden)).reshape(1, h_p)
    wcls = _pad2d(params["cls_w"], h_p, o_p)
    bcls = jnp.pad(params["cls_b"], (0, o_p - out_feats)).reshape(1, o_p)

    flops = (2 * n_p * f_p * h_p
             + 3 * (2 * n_p * h_p * h_p + 2 * n_p * n_p * h_p)
             + 2 * g_p * n_p * h_p
             + 2 * g_p * h_p * o_p)
    bytes_accessed = (a_pad.size * 2 + 3 * w1.size * 2
                      + (p_pad.size + x_pad.size + wpre.size + wcls.size) * 4
                      + (bpre.size + 3 * b1.size + bcls.size) * 4
                      + g_p * o_p * 4)

    out_pad = pl.pallas_call(
        _fused_gcn_kernel,
        out_shape=jax.ShapeDtypeStruct((g_p, o_p), jnp.float32),
        compiler_params=pltpu.CompilerParams(vmem_limit_bytes=32 * 1024 * 1024),
        cost_estimate=pl.CostEstimate(flops=flops, transcendentals=0,
                                      bytes_accessed=bytes_accessed),
    )(a_pad, p_pad, x_pad, wpre, bpre, w1, b1, w2, b2, w3, b3, wcls, bcls)

    return out_pad[:num_graphs, :out_feats]


def gcn_reference(params, x, edge_index, batch, num_graphs):
    """Pure-JAX f32 reference for correctness checking."""
    a_hat = build_normalized_adjacency(edge_index, x.shape[0])
    p = build_pool_matrix(batch, num_graphs, x.shape[0])
    h = jnp.maximum(x @ params["pre_w"] + params["pre_b"], 0.0)
    for k in ("c1", "c2", "c3"):
        h = jnp.maximum(a_hat @ (h @ params[k + "_w"]) + params[k + "_b"], 0.0)
    g = p @ h
    return g @ params["cls_w"] + params["cls_b"]


# ----------------------------- main -------------------------------------------

if __name__ == "__main__":
    in_feats, hidden, out_feats = 8, 32, 4
    n_nodes_per_graph, num_graphs = 8, 2
    n_nodes = n_nodes_per_graph * num_graphs

    key = jax.random.PRNGKey(0)
    k_x, k_p = jax.random.split(key)

    # Node features [N, in_feats]
    x = jax.random.normal(k_x, (n_nodes, in_feats), jnp.float32)

    # Two disjoint chain graphs with bidirectional edges.
    src_list, dst_list = [], []
    for g in range(num_graphs):
        base = g * n_nodes_per_graph
        for i in range(n_nodes_per_graph - 1):
            src_list += [base + i, base + i + 1]
            dst_list += [base + i + 1, base + i]
    edge_index = jnp.array([src_list, dst_list], dtype=jnp.int32)

    batch = jnp.repeat(jnp.arange(num_graphs, dtype=jnp.int32), n_nodes_per_graph)

    params = init_params(k_p, in_feats, hidden, out_feats)

    fwd = jax.jit(functools.partial(gcn_forward, num_graphs=num_graphs))
    out = jax.block_until_ready(fwd(params, x, edge_index, batch))
    assert out.shape == (num_graphs, out_feats)

    ref = gcn_reference(params, x, edge_index, batch, num_graphs)
    assert bool(jnp.all(jnp.isfinite(out)))
    # Loose tolerance: GCN-layer matmuls run on the bf16 MXU path.
    assert bool(jnp.allclose(out, ref, rtol=1e-1, atol=1e-1))

    print("KERNEL_OK")
</pallas_src>

<mosaic_0001>
module attributes {stable_mosaic.version = 11 : i64} {
  func.func @_fused_gcn_kernel(%arg0: memref<128x128xbf16, #tpu.memory_space<vmem>>, %arg1: memref<8x128xf32, #tpu.memory_space<vmem>>, %arg2: memref<128x128xf32, #tpu.memory_space<vmem>>, %arg3: memref<128x128xf32, #tpu.memory_space<vmem>>, %arg4: memref<1x128xf32, #tpu.memory_space<vmem>>, %arg5: memref<128x128xbf16, #tpu.memory_space<vmem>>, %arg6: memref<1x128xf32, #tpu.memory_space<vmem>>, %arg7: memref<128x128xbf16, #tpu.memory_space<vmem>>, %arg8: memref<1x128xf32, #tpu.memory_space<vmem>>, %arg9: memref<128x128xbf16, #tpu.memory_space<vmem>>, %arg10: memref<1x128xf32, #tpu.memory_space<vmem>>, %arg11: memref<128x128xf32, #tpu.memory_space<vmem>>, %arg12: memref<1x128xf32, #tpu.memory_space<vmem>>, %arg13: memref<8x128xf32, #tpu.memory_space<vmem>>) attributes {dimension_semantics = [], scalar_prefetch = 0 : i64, scratch_operands = 0 : i64, tpu.core_type = #tpu.core_type<tc>} {
    %c0 = arith.constant 0 : index
    %c0_0 = arith.constant 0 : index
    %0 = vector.load %arg2[%c0, %c0_0] : memref<128x128xf32, #tpu.memory_space<vmem>>, vector<128x128xf32>
    %c0_1 = arith.constant 0 : index
    %c0_2 = arith.constant 0 : index
    %1 = vector.load %arg3[%c0_1, %c0_2] : memref<128x128xf32, #tpu.memory_space<vmem>>, vector<128x128xf32>
    %cst = arith.constant dense<0.000000e+00> : vector<128x128xf32>
    %2 = tpu.matmul %0, %1, %cst {dimension_numbers = #tpu.dot_dimension_numbers<[1], [0], [0], [1], [0, 0, 1, 1], [], []>} : vector<128x128xf32>, vector<128x128xf32>, vector<128x128xf32> -> vector<128x128xf32>
    %c0_3 = arith.constant 0 : index
    %c0_4 = arith.constant 0 : index
    %3 = vector.load %arg4[%c0_3, %c0_4] : memref<1x128xf32, #tpu.memory_space<vmem>>, vector<1x128xf32>
    %4 = vector.broadcast %3 : vector<1x128xf32> to vector<128x128xf32>
    %5 = arith.addf %2, %4 : vector<128x128xf32>
    %cst_5 = arith.constant 0.000000e+00 : f32
    %6 = vector.broadcast %cst_5 : f32 to vector<128x128xf32>
    %7 = arith.maximumf %5, %6 : vector<128x128xf32>
    %c0_6 = arith.constant 0 : index
    %c0_7 = arith.constant 0 : index
    %8 = vector.load %arg0[%c0_6, %c0_7] : memref<128x128xbf16, #tpu.memory_space<vmem>>, vector<128x128xbf16>
    %9 = arith.truncf %7 : vector<128x128xf32> to vector<128x128xbf16>
    %c0_8 = arith.constant 0 : index
    %c0_9 = arith.constant 0 : index
    %10 = vector.load %arg5[%c0_8, %c0_9] : memref<128x128xbf16, #tpu.memory_space<vmem>>, vector<128x128xbf16>
    %cst_10 = arith.constant dense<0.000000e+00> : vector<128x128xf32>
    %11 = tpu.matmul %9, %10, %cst_10 {dimension_numbers = #tpu.dot_dimension_numbers<[1], [0], [0], [1], [0, 0, 1, 1], [], []>} : vector<128x128xbf16>, vector<128x128xbf16>, vector<128x128xf32> -> vector<128x128xf32>
    %12 = arith.truncf %11 : vector<128x128xf32> to vector<128x128xbf16>
    %cst_11 = arith.constant dense<0.000000e+00> : vector<128x128xf32>
    %13 = tpu.matmul %8, %12, %cst_11 {dimension_numbers = #tpu.dot_dimension_numbers<[1], [0], [0], [1], [0, 0, 1, 1], [], []>} : vector<128x128xbf16>, vector<128x128xbf16>, vector<128x128xf32> -> vector<128x128xf32>
    %c0_12 = arith.constant 0 : index
    %c0_13 = arith.constant 0 : index
    %14 = vector.load %arg6[%c0_12, %c0_13] : memref<1x128xf32, #tpu.memory_space<vmem>>, vector<1x128xf32>
    %15 = vector.broadcast %14 : vector<1x128xf32> to vector<128x128xf32>
    %16 = arith.addf %13, %15 : vector<128x128xf32>
    %cst_14 = arith.constant 0.000000e+00 : f32
    %17 = vector.broadcast %cst_14 : f32 to vector<128x128xf32>
    %18 = arith.maximumf %16, %17 : vector<128x128xf32>
    %19 = arith.truncf %18 : vector<128x128xf32> to vector<128x128xbf16>
    %c0_15 = arith.constant 0 : index
    %c0_16 = arith.constant 0 : index
    %20 = vector.load %arg7[%c0_15, %c0_16] : memref<128x128xbf16, #tpu.memory_space<vmem>>, vector<128x128xbf16>
    %cst_17 = arith.constant dense<0.000000e+00> : vector<128x128xf32>
    %21 = tpu.matmul %19, %20, %cst_17 {dimension_numbers = #tpu.dot_dimension_numbers<[1], [0], [0], [1], [0, 0, 1, 1], [], []>} : vector<128x128xbf16>, vector<128x128xbf16>, vector<128x128xf32> -> vector<128x128xf32>
    %22 = arith.truncf %21 : vector<128x128xf32> to vector<128x128xbf16>
    %cst_18 = arith.constant dense<0.000000e+00> : vector<128x128xf32>
    %23 = tpu.matmul %8, %22, %cst_18 {dimension_numbers = #tpu.dot_dimension_numbers<[1], [0], [0], [1], [0, 0, 1, 1], [], []>} : vector<128x128xbf16>, vector<128x128xbf16>, vector<128x128xf32> -> vector<128x128xf32>
    %c0_19 = arith.constant 0 : index
    %c0_20 = arith.constant 0 : index
    %24 = vector.load %arg8[%c0_19, %c0_20] : memref<1x128xf32, #tpu.memory_space<vmem>>, vector<1x128xf32>
    %25 = vector.broadcast %24 : vector<1x128xf32> to vector<128x128xf32>
    %26 = arith.addf %23, %25 : vector<128x128xf32>
    %cst_21 = arith.constant 0.000000e+00 : f32
    %27 = vector.broadcast %cst_21 : f32 to vector<128x128xf32>
    %28 = arith.maximumf %26, %27 : vector<128x128xf32>
    %29 = arith.truncf %28 : vector<128x128xf32> to vector<128x128xbf16>
    %c0_22 = arith.constant 0 : index
    %c0_23 = arith.constant 0 : index
    %30 = vector.load %arg9[%c0_22, %c0_23] : memref<128x128xbf16, #tpu.memory_space<vmem>>, vector<128x128xbf16>
    %cst_24 = arith.constant dense<0.000000e+00> : vector<128x128xf32>
    %31 = tpu.matmul %29, %30, %cst_24 {dimension_numbers = #tpu.dot_dimension_numbers<[1], [0], [0], [1], [0, 0, 1, 1], [], []>} : vector<128x128xbf16>, vector<128x128xbf16>, vector<128x128xf32> -> vector<128x128xf32>
    %32 = arith.truncf %31 : vector<128x128xf32> to vector<128x128xbf16>
    %cst_25 = arith.constant dense<0.000000e+00> : vector<128x128xf32>
    %33 = tpu.matmul %8, %32, %cst_25 {dimension_numbers = #tpu.dot_dimension_numbers<[1], [0], [0], [1], [0, 0, 1, 1], [], []>} : vector<128x128xbf16>, vector<128x128xbf16>, vector<128x128xf32> -> vector<128x128xf32>
    %c0_26 = arith.constant 0 : index
    %c0_27 = arith.constant 0 : index
    %34 = vector.load %arg10[%c0_26, %c0_27] : memref<1x128xf32, #tpu.memory_space<vmem>>, vector<1x128xf32>
    %35 = vector.broadcast %34 : vector<1x128xf32> to vector<128x128xf32>
    %36 = arith.addf %33, %35 : vector<128x128xf32>
    %cst_28 = arith.constant 0.000000e+00 : f32
    %37 = vector.broadcast %cst_28 : f32 to vector<128x128xf32>
    %38 = arith.maximumf %36, %37 : vector<128x128xf32>
    %c0_29 = arith.constant 0 : index
    %c0_30 = arith.constant 0 : index
    %39 = vector.load %arg1[%c0_29, %c0_30] : memref<8x128xf32, #tpu.memory_space<vmem>>, vector<8x128xf32>
    %cst_31 = arith.constant dense<0.000000e+00> : vector<8x128xf32>
    %40 = tpu.matmul %39, %38, %cst_31 {dimension_numbers = #tpu.dot_dimension_numbers<[1], [0], [0], [1], [0, 0, 1, 1], [], []>} : vector<8x128xf32>, vector<128x128xf32>, vector<8x128xf32> -> vector<8x128xf32>
    %c0_32 = arith.constant 0 : index
    %c0_33 = arith.constant 0 : index
    %41 = vector.load %arg11[%c0_32, %c0_33] : memref<128x128xf32, #tpu.memory_space<vmem>>, vector<128x128xf32>
    %cst_34 = arith.constant dense<0.000000e+00> : vector<8x128xf32>
    %42 = tpu.matmul %40, %41, %cst_34 {dimension_numbers = #tpu.dot_dimension_numbers<[1], [0], [0], [1], [0, 0, 1, 1], [], []>} : vector<8x128xf32>, vector<128x128xf32>, vector<8x128xf32> -> vector<8x128xf32>
    %c0_35 = arith.constant 0 : index
    %c0_36 = arith.constant 0 : index
    %43 = vector.load %arg12[%c0_35, %c0_36] : memref<1x128xf32, #tpu.memory_space<vmem>>, vector<1x128xf32>
    %44 = vector.broadcast %43 : vector<1x128xf32> to vector<8x128xf32>
    %45 = arith.addf %42, %44 : vector<8x128xf32>
    %c0_37 = arith.constant 0 : index
    %c0_38 = arith.constant 0 : index
    %46 = vector.load %arg13[%c0_37, %c0_38] : memref<8x128xf32, #tpu.memory_space<vmem>>, vector<8x128xf32>
    tpu.vector_store %arg13[%c0_37, %c0_38], %45 {strides = array<i32>} : memref<8x128xf32, #tpu.memory_space<vmem>>, vector<8x128xf32>,
    return
  }
}

</mosaic_0001>

<bundles_post_ra>
// kernel: gcn_forward.1
= control target key start
LH: loop header
LB: loop body
LE: loop exit
PB: predicated region body
PF: predicated region fallthrough
CT: control target
= control target key end

     0   :  { %vm2002_vm0 = vmmov 0   ;;  %s2391_s3 = inlined_call_operand.vmem [shape: f32[128,128], index: 3, kind: input, shape index: {}]   ;;  %s2392_s2 = inlined_call_operand.vmem [shape: f32[128,128], index: 2, kind: input, shape index: {}]   ;;  %s2393_s5 = inlined_call_operand.vmem [shape: bf16[128,128], index: 5, kind: input, shape index: {}]   ;;  %s2394_s4 = inlined_call_operand.vmem [shape: f32[1,128], index: 4, kind: input, shape index: {}]   ;;  %s2395_s0 = inlined_call_operand.vmem [shape: bf16[128,128], index: 0, kind: input, shape index: {}]   ;;  %s2396_s7 = inlined_call_operand.vmem [shape: bf16[128,128], index: 7, kind: input, shape index: {}]   ;;  %s2397_s6 = inlined_call_operand.vmem [shape: f32[1,128], index: 6, kind: input, shape index: {}]   ;;  %s2398_s9 = inlined_call_operand.vmem [shape: bf16[128,128], index: 9, kind: input, shape index: {}]   ;;  %s2399_s8 = inlined_call_operand.vmem [shape: f32[1,128], index: 8, kind: input, shape index: {}]   ;;  %s2400_s11 = inlined_call_operand.vmem [shape: f32[128,128], index: 11, kind: input, shape index: {}]   ;;  %s2401_s10 = inlined_call_operand.vmem [shape: f32[1,128], index: 10, kind: input, shape index: {}]   ;;  %s2402_s1 = inlined_call_operand.vmem [shape: f32[8,128], index: 1, kind: input, shape index: {}]   ;;  %s2403_s12 = inlined_call_operand.vmem [shape: f32[1,128], index: 12, kind: input, shape index: {}]   ;;  %s2404_s13 = inlined_call_operand.vmem [shape: f32[8,128], index: 13, kind: output, shape index: {}]  }
   0x1   :  { %v61_v0 = vld [vmem:[%s2391_s3] sm:$0xff]  ;;  %v62_v1 = vld [vmem:[%s2391_s3 + $0x8] sm:$0xff]  ;;  %v63_v2 = vld [vmem:[%s2391_s3 + $0x10] sm:$0xff] }
   0x2   :  { %v1886_v3 = vpack.c.bf16 %v62_v1, %v61_v0  ;;  %v64_v4 = vld [vmem:[%s2391_s3 + $0x18] sm:$0xff]  ;;  %v65_v6 = vld [vmem:[%s2391_s3 + $0x20] sm:$0xff]  ;;  %v66_v7 = vld [vmem:[%s2391_s3 + $0x28] sm:$0xff] }
   0x3   :  { %v1890_v5 = vpack.c.bf16 %v64_v4, %v63_v2  ;;  %v1894_v8 = vpack.c.bf16 %v66_v7, %v65_v6  ;;  %v45_v9 = vld [vmem:[%s2392_s2] sm:$0xff]  ;;  %v67_v10 = vld [vmem:[%s2391_s3 + $0x30] sm:$0xff]  ;;  %v68_v11 = vld [vmem:[%s2391_s3 + $0x38] sm:$0xff] }
   0x4   :  { %1887 = vmatprep.subr.bf16.mxu0 %v1886_v3  ;;  %1600 = vmatprep.mubr.f32.mxu0 %v45_v9  ;;  %v1898_v12 = vpack.c.bf16 %v68_v11, %v67_v10  ;;  %v69_v13 = vld [vmem:[%s2391_s3 + $0x40] sm:$0xff]  ;;  %v70_v14 = vld [vmem:[%s2391_s3 + $0x48] sm:$0xff]  ;;  %v71_v18 = vld [vmem:[%s2391_s3 + $0x50] sm:$0xff] }
   0x5   :  { %1889 = vmatpush3.bf16.msra.mxu0 %v1886_v3  ;;  %v1969_v15 = vld [vmem:[%s2393_s5] sm:$0xff]   ;;  %v1970_v16 = vld [vmem:[%s2393_s5 + $0x8] sm:$0xff]   ;;  %v1902_v17 = vpack.c.bf16 %v70_v14, %v69_v13  ;;  %v72_v19 = vld [vmem:[%s2391_s3 + $0x58] sm:$0xff] }
   0x6   :  { %1891 = vmatprep.subr.bf16.mxu0 %v1890_v5  ;;  %1624 = vmatprep.subr.bf16.mxu1 %v1969_v15  ;;  %v1971_v20 = vld [vmem:[%s2393_s5 + $0x10] sm:$0xff]   ;;  %v1906_v21 = vpack.c.bf16 %v72_v19, %v71_v18  ;;  %v73_v22 = vld [vmem:[%s2391_s3 + $0x60] sm:$0xff]  ;;  %v74_v23 = vld [vmem:[%s2391_s3 + $0x68] sm:$0xff] }
   0x7   :  { %1625 = vmatpush3.bf16.msra.mxu1 %v1969_v15  ;;  %v1972_v24 = vld [vmem:[%s2393_s5 + $0x18] sm:$0xff]   ;;  %v1910_v25 = vpack.c.bf16 %v74_v23, %v73_v22  ;;  %v75_v26 = vld [vmem:[%s2391_s3 + $0x70] sm:$0xff]  ;;  %v1973_v28 = vld [vmem:[%s2393_s5 + $0x20] sm:$0xff]  }
   0x8   :  { %1626 = vmatprep.subr.bf16.mxu1 %v1970_v16  ;;  %v76_v27 = vld [vmem:[%s2391_s3 + $0x78] sm:$0xff]  ;;  %v46_v30 = vld [vmem:[%s2392_s2 + $0x8] sm:$0xff]  ;;  %v47_v31 = vld [vmem:[%s2392_s2 + $0x10] sm:$0xff] }
   0x9   :  { %1893 = vmatpush3.bf16.msra.mxu0 %v1890_v5  ;;  %v1914_v29 = vpack.c.bf16 %v76_v27, %v75_v26  ;;  %v48_v32 = vld [vmem:[%s2392_s2 + $0x18] sm:$0xff]  ;;  %v49_v33 = vld [vmem:[%s2392_s2 + $0x20] sm:$0xff]  ;;  %v50_v34 = vld [vmem:[%s2392_s2 + $0x28] sm:$0xff] }
   0xa   :  { %1895 = vmatprep.subr.bf16.mxu0 %v1894_v8  ;;  %v51_v35 = vld [vmem:[%s2392_s2 + $0x30] sm:$0xff]  ;;  %v52_v36 = vld [vmem:[%s2392_s2 + $0x38] sm:$0xff]  ;;  %v53_v37 = vld [vmem:[%s2392_s2 + $0x40] sm:$0xff] }
   0xb   :  { %1627 = vmatpush3.bf16.msra.mxu1 %v1970_v16  ;;  %v54_v38 = vld [vmem:[%s2392_s2 + $0x48] sm:$0xff]  ;;  %v55_v39 = vld [vmem:[%s2392_s2 + $0x50] sm:$0xff]  ;;  %v56_v40 = vld [vmem:[%s2392_s2 + $0x58] sm:$0xff] }
   0xc   :  { %1628 = vmatprep.subr.bf16.mxu1 %v1971_v20  ;;  %v57_v41 = vld [vmem:[%s2392_s2 + $0x60] sm:$0xff]  ;;  %v58_v42 = vld [vmem:[%s2392_s2 + $0x68] sm:$0xff]  ;;  %v59_v43 = vld [vmem:[%s2392_s2 + $0x70] sm:$0xff] }
   0xd   :  { %1897 = vmatpush3.bf16.msra.mxu0 %v1894_v8  ;;  %v60_v44 = vld [vmem:[%s2392_s2 + $0x78] sm:$0xff]  ;;  %v1974_v45 = vld [vmem:[%s2393_s5 + $0x28] sm:$0xff]   ;;  %v1975_v46 = vld [vmem:[%s2393_s5 + $0x30] sm:$0xff]  }
   0xe   :  { %1899 = vmatprep.subr.bf16.mxu0 %v1898_v12  ;;  %v1976_v47 = vld [vmem:[%s2393_s5 + $0x38] sm:$0xff]   ;;  %v1369_v48 = vld [vmem:[%s2394_s4] ss:$0 sm:$0xff] }
   0xf   :  { %1629 = vmatpush3.bf16.msra.mxu1 %v1971_v20 }
  0x10   :  { %1630 = vmatprep.subr.bf16.mxu1 %v1972_v24 }
  0x11   :  { %1901 = vmatpush3.bf16.msra.mxu0 %v1898_v12 }
  0x12   :  { %1903 = vmatprep.subr.bf16.mxu0 %v1902_v17 }
  0x13   :  { %1631 = vmatpush3.bf16.msra.mxu1 %v1972_v24 }
  0x14   :  { %1632 = vmatprep.subr.bf16.mxu1 %v1973_v28 }
  0x15   :  { %1905 = vmatpush3.bf16.msra.mxu0 %v1902_v17 }
  0x16   :  { %1907 = vmatprep.subr.bf16.mxu0 %v1906_v21 }
  0x17   :  { %1633 = vmatpush3.bf16.msra.mxu1 %v1973_v28 }
  0x18   :  { %1634 = vmatprep.subr.bf16.mxu1 %v1974_v45 }
  0x19   :  { %1909 = vmatpush3.bf16.msra.mxu0 %v1906_v21 }
  0x1a   :  { %1911 = vmatprep.subr.bf16.mxu0 %v1910_v25 }
  0x1b   :  { %1635 = vmatpush3.bf16.msra.mxu1 %v1974_v45  ;;  %v1988_v45 = vld [vmem:[%s2396_s7 + $0x18] sm:$0xff]  }
  0x1c   :  { %1636 = vmatprep.subr.bf16.mxu1 %v1975_v46 }
  0x1d   :  { %1913 = vmatpush3.bf16.msra.mxu0 %v1910_v25 }
  0x1e   :  { %1915 = vmatprep.subr.bf16.mxu0 %v1914_v29 }
  0x1f   :  { %1637 = vmatpush3.bf16.msra.mxu1 %v1975_v46  ;;  %v1989_v46 = vld [vmem:[%s2396_s7 + $0x20] sm:$0xff]  }
  0x20   :  { %1638 = vmatprep.subr.bf16.mxu1 %v1976_v47 }
  0x21   :  { %1917 = vmatpush3.bf16.msra.mxu0 %v1914_v29 }
  0x23   :  { %1639 = vmatpush3.bf16.msra.mxu1 %v1976_v47  ;;  %v1990_v47 = vld [vmem:[%s2396_s7 + $0x28] sm:$0xff]  }
  0x24   :  { %1601 = vmatmul.mubr.f32.vlgmr.msra.gmra.mrb[0].mxu0 %v46_v30 }
  0x25   :  { %1603 = vmatprep.mubr.f32.mxu0 %v47_v31 }
  0x28   :  { %1604 = vmatmul.mubr.f32.gmra.mrb[2].mxu0 %v48_v32 }
  0x29   :  { %1606 = vmatprep.mubr.f32.mxu0 %v49_v33 }
  0x2c   :  { %1607 = vmatmul.mubr.f32.gmra.mrb[4].mxu0 %v50_v34 }
  0x2d   :  { %1609 = vmatprep.mubr.f32.mxu0 %v51_v35 }
  0x30   :  { %1610 = vmatmul.mubr.f32.gmra.mrb[6].mxu0 %v52_v36 }
  0x31   :  { %1612 = vmatprep.mubr.f32.mxu0 %v53_v37 }
  0x34   :  { %1613 = vmatmul.mubr.f32.gmra.mrb[8].mxu0 %v54_v38 }
  0x35   :  { %1615 = vmatprep.mubr.f32.mxu0 %v55_v39 }
  0x38   :  { %1616 = vmatmul.mubr.f32.gmra.mrb[10].mxu0 %v56_v40 }
  0x39   :  { %1618 = vmatprep.mubr.f32.mxu0 %v57_v41  ;;  %v2200_v41 = vld [vmem:[%s2395_s0] sm:$0xff]  }
  0x3c   :  { %1619 = vmatmul.mubr.f32.gmra.mrb[12].mxu0 %v58_v42  ;;  %v1985_v42 = vld [vmem:[%s2396_s7] sm:$0xff]  }
  0x3d   :  { %1621 = vmatprep.mubr.f32.mxu0 %v59_v43  ;;  %v1986_v43 = vld [vmem:[%s2396_s7 + $0x8] sm:$0xff]   ;;  %1688 = vmatprep.subr.bf16.mxu1 %v1985_v42 }
  0x40   :  { %1622 = vmatmul.mubr.f32.gmra.mrb[14].mxu0 %v60_v44  ;;  %v1987_v44 = vld [vmem:[%s2396_s7 + $0x10] sm:$0xff]  }
  0x41   :  { %1672 = vmatprep.mubr.bf16.mxu0 %v2200_v41 }
  0xf7   :  { %v1602_v49 = vpop.f32.mrb[0].mxu0 }
  0xf8   :  { %v156_v50 = vadd.f32 %v1602_v49, %v1369_v48  ;;  %v150_v51 = vpop.f32.mrb[1].mxu0 }
  0xf9   :  { %v151_v52 = vadd.f32 %v1369_v48, %v150_v51 }
  0xfa   :  { %v230_v53 = vmax.f32 %v156_v50, 0.0 }
  0xfb   :  { %v229_v54 = vmax.f32 %v151_v52, 0.0  ;;  %v1605_v55 = vpop.f32.mrb[2].mxu0 }
  0xfc   :  { %v166_v56 = vadd.f32 %v1605_v55, %v1369_v48  ;;  %v160_v57 = vpop.f32.mrb[3].mxu0 }
  0xfd   :  { %v161_v58 = vadd.f32 %v1369_v48, %v160_v57  ;;  %v261_v59 = vpack.c.bf16 %v230_v53, %v229_v54 }
  0xfe   :  { %v232_v60 = vmax.f32 %v166_v56, 0.0 }
  0xff   :  { %v231_v61 = vmax.f32 %v161_v58, 0.0  ;;  %v1608_v62 = vpop.f32.mrb[4].mxu0  ;;  %1640 = vmatprep.mubr.bf16.mxu1 %v261_v59 }
 0x100   :  { %v176_v63 = vadd.f32 %v1608_v62, %v1369_v48  ;;  %v170_v0 = vpop.f32.mrb[5].mxu0 }
 0x101   :  { %v262_v1 = vpack.c.bf16 %v232_v60, %v231_v61  ;;  %v171_v2 = vadd.f32 %v1369_v48, %v170_v0 }
 0x102   :  { %v234_v3 = vmax.f32 %v176_v63, 0.0 }
 0x103   :  { %v233_v4 = vmax.f32 %v171_v2, 0.0  ;;  %v1611_v5 = vpop.f32.mrb[6].mxu0  ;;  %1641 = vmatmul.mubr.bf16.vlgmr.msra.gmra.mrb[0].mxu1 %v262_v1 }
 0x104   :  { %v186_v6 = vadd.f32 %v1611_v5, %v1369_v48  ;;  %v180_v7 = vpop.f32.mrb[7].mxu0  ;;  %1689 = vmatpush3.bf16.msra.mxu1 %v1985_v42 }
 0x105   :  { %v263_v8 = vpack.c.bf16 %v234_v3, %v233_v4  ;;  %v181_v9 = vadd.f32 %v1369_v48, %v180_v7  ;;  %1690 = vmatprep.subr.bf16.mxu1 %v1986_v43 }
 0x106   :  { %v236_v10 = vmax.f32 %v186_v6, 0.0 }
 0x107   :  { %v235_v11 = vmax.f32 %v181_v9, 0.0  ;;  %v1614_v12 = vpop.f32.mrb[8].mxu0  ;;  %1644 = vmatprep.mubr.bf16.mxu1 %v263_v8  ;;  %v2224_v8 = vld [vmem:[%s2395_s0 + $0x8] sm:$0xff]   ;;  %v2229_v9 = vld [vmem:[%s2395_s0 + $0x10] sm:$0xff]  }
 0x108   :  { %v196_v13 = vadd.f32 %v1614_v12, %v1369_v48  ;;  %v190_v14 = vpop.f32.mrb[9].mxu0  ;;  %1691 = vmatpush3.bf16.msra.mxu1 %v1986_v43  ;;  %v2248_v12 = vld [vmem:[%s2395_s0 + $0x28] sm:$0xff]  }
 0x109   :  { %v264_v15 = vpack.c.bf16 %v236_v10, %v235_v11  ;;  %v191_v16 = vadd.f32 %v1369_v48, %v190_v14  ;;  %1692 = vmatprep.subr.bf16.mxu1 %v1987_v44  ;;  %v2236_v10 = vld [vmem:[%s2395_s0 + $0x18] sm:$0xff]   ;;  %v2241_v11 = vld [vmem:[%s2395_s0 + $0x20] sm:$0xff]  }
 0x10a   :  { %v238_v17 = vmax.f32 %v196_v13, 0.0  ;;  %v2253_v13 = vld [vmem:[%s2395_s0 + $0x30] sm:$0xff]   ;;  %v2260_v14 = vld [vmem:[%s2395_s0 + $0x38] sm:$0xff]  }
 0x10b   :  { %v237_v18 = vmax.f32 %v191_v16, 0.0  ;;  %v1617_v19 = vpop.f32.mrb[10].mxu0  ;;  %1645 = vmatmul.mubr.bf16.gmra.mrb[4].mxu1 %v264_v15  ;;  %v1991_v15 = vld [vmem:[%s2396_s7 + $0x30] sm:$0xff]   ;;  %v1992_v16 = vld [vmem:[%s2396_s7 + $0x38] sm:$0xff]  }
 0x10c   :  { %v206_v20 = vadd.f32 %v1617_v19, %v1369_v48  ;;  %v200_v21 = vpop.f32.mrb[11].mxu0  ;;  %1693 = vmatpush3.bf16.msra.mxu1 %v1987_v44 }
 0x10d   :  { %v265_v22 = vpack.c.bf16 %v238_v17, %v237_v18  ;;  %v201_v23 = vadd.f32 %v1369_v48, %v200_v21  ;;  %1694 = vmatprep.subr.bf16.mxu1 %v1988_v45  ;;  %v1378_v17 = vld [vmem:[%s2397_s6] ss:$0 sm:$0xff] }
 0x10e   :  { %v240_v24 = vmax.f32 %v206_v20, 0.0 }
 0x10f   :  { %v239_v25 = vmax.f32 %v201_v23, 0.0  ;;  %v1620_v26 = vpop.f32.mrb[12].mxu0  ;;  %1648 = vmatprep.mubr.bf16.mxu1 %v265_v22 }
 0x110   :  { %v216_v27 = vadd.f32 %v1620_v26, %v1369_v48  ;;  %v210_v28 = vpop.f32.mrb[13].mxu0  ;;  %1695 = vmatpush3.bf16.msra.mxu1 %v1988_v45 }
 0x111   :  { %v266_v29 = vpack.c.bf16 %v240_v24, %v239_v25  ;;  %v211_v30 = vadd.f32 %v1369_v48, %v210_v28  ;;  %1696 = vmatprep.subr.bf16.mxu1 %v1989_v46 }
 0x112   :  { %v242_v31 = vmax.f32 %v216_v27, 0.0 }
 0x113   :  { %v241_v32 = vmax.f32 %v211_v30, 0.0  ;;  %v1623_v33 = vpop.f32.mrb[14].mxu0  ;;  %1649 = vmatmul.mubr.bf16.gmra.mrb[8].mxu1 %v266_v29 }
 0x114   :  { %v226_v34 = vadd.f32 %v1623_v33, %v1369_v48  ;;  %v220_v35 = vpop.f32.mrb[15].mxu0  ;;  %1697 = vmatpush3.bf16.msra.mxu1 %v1989_v46 }
 0x115   :  { %v267_v36 = vpack.c.bf16 %v242_v31, %v241_v32  ;;  %v221_v37 = vadd.f32 %v1369_v48, %v220_v35  ;;  %1698 = vmatprep.subr.bf16.mxu1 %v1990_v47 }
 0x116   :  { %v244_v38 = vmax.f32 %v226_v34, 0.0 }
 0x117   :  { %v243_v39 = vmax.f32 %v221_v37, 0.0  ;;  %1652 = vmatprep.mubr.bf16.mxu1 %v267_v36 }
 0x118   :  { %1699 = vmatpush3.bf16.msra.mxu1 %v1990_v47 }
 0x119   :  { %v268_v40 = vpack.c.bf16 %v244_v38, %v243_v39  ;;  %1700 = vmatprep.subr.bf16.mxu1 %v1991_v15 }
 0x11b   :  { %1653 = vmatmul.mubr.bf16.gmra.mrb[12].mxu1 %v268_v40 }
 0x11c   :  { %1701 = vmatpush3.bf16.msra.mxu1 %v1991_v15 }
 0x11d   :  { %1702 = vmatprep.subr.bf16.mxu1 %v1992_v16 }
 0x120   :  { %1703 = vmatpush3.bf16.msra.mxu1 %v1992_v16 }
 0x1d6   :  { %v1642_v48 = vpop.f32.mrb[0].mxu1 }
 0x1d7   :  { %v367_v49 = vpop.f32.mrb[1].mxu1 }
 0x1d8   :  { %v1643_v50 = vpop.f32.mrb[2].mxu1 }
 0x1d9   :  { %v431_v51 = vpack.c.bf16 %v1643_v50, %v1642_v48  ;;  %v370_v52 = vpop.f32.mrb[3].mxu1 }
 0x1da   :  { %v430_v53 = vpack.c.bf16 %v370_v52, %v367_v49 }
 0x1dc   :  { %1656 = vmatprep.subr.bf16.mxu0 %v430_v53 }
 0x1dd   :  { %1657 = vmatpush3.bf16.msra.mxu0 %v430_v53 }
 0x1de   :  { %v1646_v54 = vpop.f32.mrb[4].mxu1  ;;  %1658 = vmatprep.subr.bf16.mxu0 %v431_v51 }
 0x1df   :  { %v383_v55 = vpop.f32.mrb[5].mxu1 }
 0x1e0   :  { %v1647_v56 = vpop.f32.mrb[6].mxu1 }
 0x1e1   :  { %v433_v57 = vpack.c.bf16 %v1647_v56, %v1646_v54  ;;  %v386_v58 = vpop.f32.mrb[7].mxu1  ;;  %1659 = vmatpush3.bf16.msra.mxu0 %v431_v51 }
 0x1e2   :  { %v432_v59 = vpack.c.bf16 %v386_v58, %v383_v55 }
 0x1e4   :  { %1660 = vmatprep.subr.bf16.mxu0 %v432_v59 }
 0x1e5   :  { %1661 = vmatpush3.bf16.msra.mxu0 %v432_v59 }
 0x1e6   :  { %v1650_v60 = vpop.f32.mrb[8].mxu1  ;;  %1662 = vmatprep.subr.bf16.mxu0 %v433_v57 }
 0x1e7   :  { %v399_v61 = vpop.f32.mrb[9].mxu1 }
 0x1e8   :  { %v1651_v62 = vpop.f32.mrb[10].mxu1 }
 0x1e9   :  { %v435_v63 = vpack.c.bf16 %v1651_v62, %v1650_v60  ;;  %v402_v0 = vpop.f32.mrb[11].mxu1  ;;  %1663 = vmatpush3.bf16.msra.mxu0 %v433_v57 }
 0x1ea   :  { %v434_v1 = vpack.c.bf16 %v402_v0, %v399_v61 }
 0x1ec   :  { %1664 = vmatprep.subr.bf16.mxu0 %v434_v1 }
 0x1ed   :  { %1665 = vmatpush3.bf16.msra.mxu0 %v434_v1 }
 0x1ee   :  { %v1654_v2 = vpop.f32.mrb[12].mxu1  ;;  %1666 = vmatprep.subr.bf16.mxu0 %v435_v63 }
 0x1ef   :  { %v415_v3 = vpop.f32.mrb[13].mxu1 }
 0x1f0   :  { %v1655_v4 = vpop.f32.mrb[14].mxu1 }
 0x1f1   :  { %v437_v5 = vpack.c.bf16 %v1655_v4, %v1654_v2  ;;  %v418_v6 = vpop.f32.mrb[15].mxu1  ;;  %1667 = vmatpush3.bf16.msra.mxu0 %v435_v63 }
 0x1f2   :  { %v436_v7 = vpack.c.bf16 %v418_v6, %v415_v3 }
 0x1f4   :  { %1668 = vmatprep.subr.bf16.mxu0 %v436_v7 }
 0x1f5   :  { %1669 = vmatpush3.bf16.msra.mxu0 %v436_v7 }
 0x1f6   :  { %1670 = vmatprep.subr.bf16.mxu0 %v437_v5 }
 0x1f9   :  { %1671 = vmatpush3.bf16.msra.mxu0 %v437_v5 }
 0x1fc   :  { %1673 = vmatmul.mubr.bf16.vlgmr.msra.gmra.mrb[16].mxu0 %v2224_v8 }
 0x1fd   :  { %1676 = vmatprep.mubr.bf16.mxu0 %v2229_v9 }
 0x204   :  { %1677 = vmatmul.mubr.bf16.gmra.mrb[20].mxu0 %v2236_v10 }
 0x205   :  { %1680 = vmatprep.mubr.bf16.mxu0 %v2241_v11 }
 0x20c   :  { %1681 = vmatmul.mubr.bf16.gmra.mrb[24].mxu0 %v2248_v12 }
 0x20d   :  { %1684 = vmatprep.mubr.bf16.mxu0 %v2253_v13 }
 0x214   :  { %1685 = vmatmul.mubr.bf16.gmra.mrb[28].mxu0 %v2260_v14 }
 0x215   :  { %1736 = vmatprep.mubr.bf16.mxu0 %v2200_v41 }
 0x2cf   :  { %v1674_v18 = vpop.f32.mrb[16].mxu0 }
 0x2d0   :  { %v536_v19 = vadd.f32 %v1674_v18, %v1378_v17  ;;  %v527_v20 = vpop.f32.mrb[17].mxu0 }
 0x2d1   :  { %v528_v21 = vadd.f32 %v1378_v17, %v527_v20  ;;  %v1675_v22 = vpop.f32.mrb[18].mxu0  ;;  %v1994_v20 = vld [vmem:[%s2398_s9 + $0x8] sm:$0xff]  }
 0x2d2   :  { %v539_v23 = vadd.f32 %v1675_v22, %v1378_v17  ;;  %v530_v24 = vpop.f32.mrb[19].mxu0  ;;  %v592_v26 = vmax.f32 %v536_v19, 0.0  ;;  %v1993_v19 = vld [vmem:[%s2398_s9] sm:$0xff]  }
 0x2d3   :  { %v531_v25 = vadd.f32 %v1378_v17, %v530_v24  ;;  %v590_v28 = vmax.f32 %v528_v21, 0.0  ;;  %1752 = vmatprep.subr.bf16.mxu1 %v1993_v19  ;;  %v1996_v21 = vld [vmem:[%s2398_s9 + $0x18] sm:$0xff]   ;;  %v1997_v22 = vld [vmem:[%s2398_s9 + $0x20] sm:$0xff]  }
 0x2d4   :  { %v593_v27 = vmax.f32 %v539_v23, 0.0  ;;  %v1998_v23 = vld [vmem:[%s2398_s9 + $0x28] sm:$0xff]  }
 0x2d5   :  { %v591_v29 = vmax.f32 %v531_v25, 0.0 }
 0x2d6   :  { %v607_v30 = vpack.c.bf16 %v593_v27, %v592_v26 }
 0x2d7   :  { %v606_v31 = vpack.c.bf16 %v591_v29, %v590_v28  ;;  %v1678_v32 = vpop.f32.mrb[20].mxu0 }
 0x2d8   :  { %v552_v33 = vadd.f32 %v1678_v32, %v1378_v17  ;;  %v543_v34 = vpop.f32.mrb[21].mxu0 }
 0x2d9   :  { %v544_v35 = vadd.f32 %v1378_v17, %v543_v34  ;;  %v1679_v36 = vpop.f32.mrb[22].mxu0  ;;  %1704 = vmatprep.mubr.bf16.mxu1 %v606_v31 }
 0x2da   :  { %v555_v37 = vadd.f32 %v1679_v36, %v1378_v17  ;;  %v546_v38 = vpop.f32.mrb[23].mxu0  ;;  %1705 = vmatmul.mubr.bf16.vlgmr.msra.gmra.mrb[16].mxu1 %v607_v30  ;;  %v596_v40 = vmax.f32 %v552_v33, 0.0 }
 0x2db   :  { %v547_v39 = vadd.f32 %v1378_v17, %v546_v38  ;;  %v594_v43 = vmax.f32 %v544_v35, 0.0  ;;  %1753 = vmatpush3.bf16.msra.mxu1 %v1993_v19 }
 0x2dc   :  { %v597_v42 = vmax.f32 %v555_v37, 0.0  ;;  %1754 = vmatprep.subr.bf16.mxu1 %v1994_v20 }
 0x2dd   :  { %v595_v44 = vmax.f32 %v547_v39, 0.0 }
 0x2de   :  { %v609_v45 = vpack.c.bf16 %v597_v42, %v596_v40 }
 0x2df   :  { %v608_v46 = vpack.c.bf16 %v595_v44, %v594_v43  ;;  %v1682_v47 = vpop.f32.mrb[24].mxu0  ;;  %1755 = vmatpush3.bf16.msra.mxu1 %v1994_v20 }
 0x2e0   :  { %v568_v48 = vadd.f32 %v1682_v47, %v1378_v17  ;;  %v559_v49 = vpop.f32.mrb[25].mxu0 }
 0x2e1   :  { %v560_v50 = vadd.f32 %v1378_v17, %v559_v49  ;;  %v1683_v51 = vpop.f32.mrb[26].mxu0  ;;  %1708 = vmatprep.mubr.bf16.mxu1 %v608_v46  ;;  %v1999_v49 = vld [vmem:[%s2398_s9 + $0x30] sm:$0xff]  }
 0x2e2   :  { %v571_v52 = vadd.f32 %v1683_v51, %v1378_v17  ;;  %v562_v53 = vpop.f32.mrb[27].mxu0  ;;  %1709 = vmatmul.mubr.bf16.gmra.mrb[20].mxu1 %v609_v45  ;;  %v600_v55 = vmax.f32 %v568_v48, 0.0  ;;  %v1395_v51 = vld [vmem:[%s2399_s8] ss:$0 sm:$0xff] }
 0x2e3   :  { %v563_v54 = vadd.f32 %v1378_v17, %v562_v53  ;;  %v598_v57 = vmax.f32 %v560_v50, 0.0  ;;  %v2000_v50 = vld [vmem:[%s2398_s9 + $0x38] sm:$0xff]  }
 0x2e4   :  { %v601_v56 = vmax.f32 %v571_v52, 0.0 }
 0x2e5   :  { %v599_v58 = vmax.f32 %v563_v54, 0.0 }
 0x2e6   :  { %v611_v59 = vpack.c.bf16 %v601_v56, %v600_v55 }
 0x2e7   :  { %v610_v60 = vpack.c.bf16 %v599_v58, %v598_v57  ;;  %v1686_v61 = vpop.f32.mrb[28].mxu0 }
 0x2e8   :  { %v584_v62 = vadd.f32 %v1686_v61, %v1378_v17  ;;  %v575_v63 = vpop.f32.mrb[29].mxu0 }
 0x2e9   :  { %v576_v0 = vadd.f32 %v1378_v17, %v575_v63  ;;  %v1687_v1 = vpop.f32.mrb[30].mxu0  ;;  %1712 = vmatprep.mubr.bf16.mxu1 %v610_v60 }
 0x2ea   :  { %v587_v2 = vadd.f32 %v1687_v1, %v1378_v17  ;;  %v578_v3 = vpop.f32.mrb[31].mxu0  ;;  %1713 = vmatmul.mubr.bf16.gmra.mrb[24].mxu1 %v611_v59  ;;  %v604_v5 = vmax.f32 %v584_v62, 0.0 }
 0x2eb   :  { %v579_v4 = vadd.f32 %v1378_v17, %v578_v3  ;;  %v602_v7 = vmax.f32 %v576_v0, 0.0  ;;  %v1995_v17 = vld [vmem:[%s2398_s9 + $0x10] sm:$0xff]  }
 0x2ec   :  { %v605_v6 = vmax.f32 %v587_v2, 0.0  ;;  %1756 = vmatprep.subr.bf16.mxu1 %v1995_v17 }
 0x2ed   :  { %v603_v15 = vmax.f32 %v579_v4, 0.0  ;;  %1757 = vmatpush3.bf16.msra.mxu1 %v1995_v17 }
 0x2ee   :  { %v613_v16 = vpack.c.bf16 %v605_v6, %v604_v5  ;;  %1758 = vmatprep.subr.bf16.mxu1 %v1996_v21 }
 0x2ef   :  { %v612_v18 = vpack.c.bf16 %v603_v15, %v602_v7 }
 0x2f1   :  { %1716 = vmatprep.mubr.bf16.mxu1 %v612_v18  ;;  %1759 = vmatpush3.bf16.msra.mxu1 %v1996_v21 }
 0x2f2   :  { %1717 = vmatmul.mubr.bf16.gmra.mrb[28].mxu1 %v613_v16  ;;  %1760 = vmatprep.subr.bf16.mxu1 %v1997_v22 }
 0x2f5   :  { %1761 = vmatpush3.bf16.msra.mxu1 %v1997_v22 }
 0x2f6   :  { %1762 = vmatprep.subr.bf16.mxu1 %v1998_v23 }
 0x2f9   :  { %1763 = vmatpush3.bf16.msra.mxu1 %v1998_v23 }
 0x2fa   :  { %1764 = vmatprep.subr.bf16.mxu1 %v1999_v49 }
 0x2fd   :  { %1765 = vmatpush3.bf16.msra.mxu1 %v1999_v49 }
 0x2fe   :  { %1766 = vmatprep.subr.bf16.mxu1 %v2000_v50 }
 0x301   :  { %1767 = vmatpush3.bf16.msra.mxu1 %v2000_v50 }
 0x3ad   :  { %v1706_v24 = vpop.f32.mrb[16].mxu1 }
 0x3ae   :  { %v712_v25 = vpop.f32.mrb[17].mxu1 }
 0x3af   :  { %v1707_v26 = vpop.f32.mrb[18].mxu1 }
 0x3b0   :  { %v776_v27 = vpack.c.bf16 %v1707_v26, %v1706_v24  ;;  %v715_v28 = vpop.f32.mrb[19].mxu1 }
 0x3b1   :  { %v775_v29 = vpack.c.bf16 %v715_v28, %v712_v25 }
 0x3b3   :  { %1720 = vmatprep.subr.bf16.mxu0 %v775_v29 }
 0x3b4   :  { %1721 = vmatpush3.bf16.msra.mxu0 %v775_v29 }
 0x3b5   :  { %v1710_v30 = vpop.f32.mrb[20].mxu1  ;;  %1722 = vmatprep.subr.bf16.mxu0 %v776_v27 }
 0x3b6   :  { %v728_v31 = vpop.f32.mrb[21].mxu1 }
 0x3b7   :  { %v1711_v32 = vpop.f32.mrb[22].mxu1 }
 0x3b8   :  { %v778_v33 = vpack.c.bf16 %v1711_v32, %v1710_v30  ;;  %v731_v34 = vpop.f32.mrb[23].mxu1  ;;  %1723 = vmatpush3.bf16.msra.mxu0 %v776_v27 }
 0x3b9   :  { %v777_v35 = vpack.c.bf16 %v731_v34, %v728_v31 }
 0x3bb   :  { %1724 = vmatprep.subr.bf16.mxu0 %v777_v35 }
 0x3bc   :  { %1725 = vmatpush3.bf16.msra.mxu0 %v777_v35 }
 0x3bd   :  { %v1714_v36 = vpop.f32.mrb[24].mxu1  ;;  %1726 = vmatprep.subr.bf16.mxu0 %v778_v33 }
 0x3be   :  { %v744_v37 = vpop.f32.mrb[25].mxu1 }
 0x3bf   :  { %v1715_v38 = vpop.f32.mrb[26].mxu1 }
 0x3c0   :  { %v780_v39 = vpack.c.bf16 %v1715_v38, %v1714_v36  ;;  %v747_v40 = vpop.f32.mrb[27].mxu1  ;;  %1727 = vmatpush3.bf16.msra.mxu0 %v778_v33 }
 0x3c1   :  { %v779_v42 = vpack.c.bf16 %v747_v40, %v744_v37 }
 0x3c3   :  { %1728 = vmatprep.subr.bf16.mxu0 %v779_v42 }
 0x3c4   :  { %1729 = vmatpush3.bf16.msra.mxu0 %v779_v42 }
 0x3c5   :  { %v1718_v43 = vpop.f32.mrb[28].mxu1  ;;  %1730 = vmatprep.subr.bf16.mxu0 %v780_v39 }
 0x3c6   :  { %v760_v44 = vpop.f32.mrb[29].mxu1 }
 0x3c7   :  { %v1719_v45 = vpop.f32.mrb[30].mxu1 }
 0x3c8   :  { %v782_v46 = vpack.c.bf16 %v1719_v45, %v1718_v43  ;;  %v763_v47 = vpop.f32.mrb[31].mxu1  ;;  %1731 = vmatpush3.bf16.msra.mxu0 %v780_v39 }
 0x3c9   :  { %v781_v48 = vpack.c.bf16 %v763_v47, %v760_v44 }
 0x3cb   :  { %1732 = vmatprep.subr.bf16.mxu0 %v781_v48 }
 0x3cc   :  { %1733 = vmatpush3.bf16.msra.mxu0 %v781_v48 }
 0x3cd   :  { %1734 = vmatprep.subr.bf16.mxu0 %v782_v46 }
 0x3d0   :  { %1735 = vmatpush3.bf16.msra.mxu0 %v782_v46 }
 0x3d3   :  { %1737 = vmatmul.mubr.bf16.vlgmr.msra.gmra.mrb[32].mxu0 %v2224_v8 }
 0x3d4   :  { %1740 = vmatprep.mubr.bf16.mxu0 %v2229_v9 }
 0x3db   :  { %1741 = vmatmul.mubr.bf16.gmra.mrb[36].mxu0 %v2236_v10 }
 0x3dc   :  { %1744 = vmatprep.mubr.bf16.mxu0 %v2241_v11 }
 0x3e3   :  { %1745 = vmatmul.mubr.bf16.gmra.mrb[40].mxu0 %v2248_v12 }
 0x3e4   :  { %1748 = vmatprep.mubr.bf16.mxu0 %v2253_v13 }
 0x3eb   :  { %1749 = vmatmul.mubr.bf16.gmra.mrb[44].mxu0 %v2260_v14 }
 0x3ec   :  { %1800 = vmatprep.mubr.bf16.mxu0 %v2200_v41 }
 0x4a6   :  { %v1738_v52 = vpop.f32.mrb[32].mxu0 }
 0x4a7   :  { %v833_v53 = vadd.f32 %v1738_v52, %v1395_v51  ;;  %v824_v54 = vpop.f32.mrb[33].mxu0 }
 0x4a8   :  { %v825_v41 = vadd.f32 %v1395_v51, %v824_v54  ;;  %v1739_v55 = vpop.f32.mrb[34].mxu0 }
 0x4a9   :  { %v836_v56 = vadd.f32 %v1739_v55, %v1395_v51  ;;  %v827_v57 = vpop.f32.mrb[35].mxu0  ;;  %v889_v59 = vmax.f32 %v833_v53, 0.0 }
 0x4aa   :  { %v828_v58 = vadd.f32 %v1395_v51, %v827_v57  ;;  %v887_v61 = vmax.f32 %v825_v41, 0.0 }
 0x4ab   :  { %v890_v60 = vmax.f32 %v836_v56, 0.0 }
 0x4ac   :  { %v888_v62 = vmax.f32 %v828_v58, 0.0 }
 0x4ad   :  { %v904_v63 = vpack.c.bf16 %v890_v60, %v889_v59 }
 0x4ae   :  { %v903_v0 = vpack.c.bf16 %v888_v62, %v887_v61  ;;  %v1742_v1 = vpop.f32.mrb[36].mxu0 }
 0x4af   :  { %v849_v2 = vadd.f32 %v1742_v1, %v1395_v51  ;;  %v840_v3 = vpop.f32.mrb[37].mxu0 }
 0x4b0   :  { %v841_v4 = vadd.f32 %v1395_v51, %v840_v3  ;;  %v1743_v5 = vpop.f32.mrb[38].mxu0  ;;  %1768 = vmatprep.mubr.bf16.mxu1 %v903_v0 }
 0x4b1   :  { %v852_v6 = vadd.f32 %v1743_v5, %v1395_v51  ;;  %v843_v7 = vpop.f32.mrb[39].mxu0  ;;  %1769 = vmatmul.mubr.bf16.vlgmr.msra.gmra.mrb[32].mxu1 %v904_v63  ;;  %v893_v16 = vmax.f32 %v849_v2, 0.0 }
 0x4b2   :  { %v844_v15 = vadd.f32 %v1395_v51, %v843_v7  ;;  %v891_v19 = vmax.f32 %v841_v4, 0.0 }
 0x4b3   :  { %v894_v18 = vmax.f32 %v852_v6, 0.0 }
 0x4b4   :  { %v892_v20 = vmax.f32 %v844_v15, 0.0 }
 0x4b5   :  { %v906_v17 = vpack.c.bf16 %v894_v18, %v893_v16  ;;  %v2001_v18 = vmov 0.0|0.0  }
 0x4b6   :  { %v905_v21 = vpack.c.bf16 %v892_v20, %v891_v19  ;;  %v1746_v22 = vpop.f32.mrb[40].mxu0  ;;  %1918 = vmatprep.subr.bf16.mxu1 %v2001_v18  ;;  %v2003_v19 = vmov 0.0   ;;  %v1276_v20 = vld [vmem:[%s2400_s11 + $0x28] sm:$0xff] }
 0x4b7   :  { %v865_v23 = vadd.f32 %v1746_v22, %v1395_v51  ;;  %v856_v24 = vpop.f32.mrb[41].mxu0  ;;  %v1278_v22 = vld [vmem:[%s2400_s11 + $0x38] sm:$0xff] }
 0x4b8   :  { %v857_v25 = vadd.f32 %v1395_v51, %v856_v24  ;;  %v1747_v26 = vpop.f32.mrb[42].mxu0  ;;  %1772 = vmatprep.mubr.bf16.mxu1 %v905_v21  ;;  %v1277_v21 = vld [vmem:[%s2400_s11 + $0x30] sm:$0xff]  ;;  %v1279_v24 = vld [vmem:[%s2400_s11 + $0x40] sm:$0xff] }
 0x4b9   :  { %v868_v27 = vadd.f32 %v1747_v26, %v1395_v51  ;;  %v859_v28 = vpop.f32.mrb[43].mxu0  ;;  %1773 = vmatmul.mubr.bf16.gmra.mrb[36].mxu1 %v906_v17  ;;  %v897_v30 = vmax.f32 %v865_v23, 0.0  ;;  %v1952_v23 = vpack.c.bf16 %v1278_v22, %v1277_v21 }
 0x4ba   :  { %v860_v29 = vadd.f32 %v1395_v51, %v859_v28  ;;  %v895_v32 = vmax.f32 %v857_v25, 0.0  ;;  %v1280_v25 = vld [vmem:[%s2400_s11 + $0x48] sm:$0xff]  ;;  %v1282_v28 = vld [vmem:[%s2400_s11 + $0x58] sm:$0xff] }
 0x4bb   :  { %v898_v31 = vmax.f32 %v868_v27, 0.0  ;;  %v1955_v26 = vpack.c.bf16 %v1280_v25, %v1279_v24  ;;  %v1281_v27 = vld [vmem:[%s2400_s11 + $0x50] sm:$0xff] }
 0x4bc   :  { %v896_v33 = vmax.f32 %v860_v29, 0.0  ;;  %v1958_v29 = vpack.c.bf16 %v1282_v28, %v1281_v27 }
 0x4bd   :  { %v908_v34 = vpack.c.bf16 %v898_v31, %v897_v30  ;;  %v1283_v30 = vld [vmem:[%s2400_s11 + $0x60] sm:$0xff]  ;;  %v1284_v31 = vld [vmem:[%s2400_s11 + $0x68] sm:$0xff] }
 0x4be   :  { %v907_v35 = vpack.c.bf16 %v896_v33, %v895_v32  ;;  %v1750_v36 = vpop.f32.mrb[44].mxu0  ;;  %v1961_v32 = vpack.c.bf16 %v1284_v31, %v1283_v30  ;;  %v1285_v33 = vld [vmem:[%s2400_s11 + $0x70] sm:$0xff]  ;;  %v1200_v30 = vld [vmem:[%s2402_s1] sm:$0xff] }
 0x4bf   :  { %v881_v37 = vadd.f32 %v1750_v36, %v1395_v51  ;;  %v872_v38 = vpop.f32.mrb[45].mxu0  ;;  %v1404_v36 = vld [vmem:[%s2401_s10] ss:$0 sm:$0xff] }
 0x4c0   :  { %v873_v39 = vadd.f32 %v1395_v51, %v872_v38  ;;  %v1751_v40 = vpop.f32.mrb[46].mxu0  ;;  %1776 = vmatprep.mubr.bf16.mxu1 %v907_v35 }
 0x4c1   :  { %v884_v42 = vadd.f32 %v1751_v40, %v1395_v51  ;;  %v875_v43 = vpop.f32.mrb[47].mxu0  ;;  %1777 = vmatmul.mubr.bf16.gmra.mrb[40].mxu1 %v908_v34  ;;  %v901_v45 = vmax.f32 %v881_v37, 0.0  ;;  %v1286_v34 = vld [vmem:[%s2400_s11 + $0x78] sm:$0xff] }
 0x4c2   :  { %v876_v44 = vadd.f32 %v1395_v51, %v875_v43  ;;  %v899_v47 = vmax.f32 %v873_v39, 0.0  ;;  %v1964_v35 = vpack.c.bf16 %v1286_v34, %v1285_v33  ;;  %v1405_v33 = vld [vmem:[%s2403_s12] ss:$0 sm:$0xff] }
 0x4c3   :  { %v902_v46 = vmax.f32 %v884_v42, 0.0 }
 0x4c4   :  { %v900_v48 = vmax.f32 %v876_v44, 0.0 }
 0x4c5   :  { %v910_v49 = vpack.c.bf16 %v902_v46, %v901_v45 }
 0x4c6   :  { %v909_v50 = vpack.c.bf16 %v900_v48, %v899_v47 }
 0x4c8   :  { %1780 = vmatprep.mubr.bf16.mxu1 %v909_v50 }
 0x4c9   :  { %1781 = vmatmul.mubr.bf16.gmra.mrb[44].mxu1 %v910_v49 }
 0x4ca   :  { %1848 = vmatprep.mubr.msk.f32.mxu1 %vm2002_vm0, %v2003_v19 }
 0x584   :  { %v1770_v52 = vpop.f32.mrb[32].mxu1 }
 0x585   :  { %v1009_v53 = vpop.f32.mrb[33].mxu1 }
 0x586   :  { %v1771_v54 = vpop.f32.mrb[34].mxu1 }
 0x587   :  { %v1073_v41 = vpack.c.bf16 %v1771_v54, %v1770_v52  ;;  %v1012_v55 = vpop.f32.mrb[35].mxu1 }
 0x588   :  { %v1072_v56 = vpack.c.bf16 %v1012_v55, %v1009_v53 }
 0x58a   :  { %1784 = vmatprep.subr.bf16.mxu0 %v1072_v56 }
 0x58b   :  { %1785 = vmatpush3.bf16.msra.mxu0 %v1072_v56 }
 0x58c   :  { %v1774_v57 = vpop.f32.mrb[36].mxu1  ;;  %1786 = vmatprep.subr.bf16.mxu0 %v1073_v41 }
 0x58d   :  { %v1025_v58 = vpop.f32.mrb[37].mxu1 }
 0x58e   :  { %v1775_v51 = vpop.f32.mrb[38].mxu1 }
 0x58f   :  { %v1075_v59 = vpack.c.bf16 %v1775_v51, %v1774_v57  ;;  %v1028_v60 = vpop.f32.mrb[39].mxu1  ;;  %1787 = vmatpush3.bf16.msra.mxu0 %v1073_v41 }
 0x590   :  { %v1074_v61 = vpack.c.bf16 %v1028_v60, %v1025_v58 }
 0x592   :  { %1788 = vmatprep.subr.bf16.mxu0 %v1074_v61 }
 0x593   :  { %1789 = vmatpush3.bf16.msra.mxu0 %v1074_v61 }
 0x594   :  { %v1778_v62 = vpop.f32.mrb[40].mxu1  ;;  %1790 = vmatprep.subr.bf16.mxu0 %v1075_v59 }
 0x595   :  { %v1041_v63 = vpop.f32.mrb[41].mxu1 }
 0x596   :  { %v1779_v0 = vpop.f32.mrb[42].mxu1 }
 0x597   :  { %v1077_v1 = vpack.c.bf16 %v1779_v0, %v1778_v62  ;;  %v1044_v2 = vpop.f32.mrb[43].mxu1  ;;  %1791 = vmatpush3.bf16.msra.mxu0 %v1075_v59 }
 0x598   :  { %v1076_v3 = vpack.c.bf16 %v1044_v2, %v1041_v63 }
 0x59a   :  { %1792 = vmatprep.subr.bf16.mxu0 %v1076_v3 }
 0x59b   :  { %1793 = vmatpush3.bf16.msra.mxu0 %v1076_v3 }
 0x59c   :  { %v1782_v4 = vpop.f32.mrb[44].mxu1  ;;  %1794 = vmatprep.subr.bf16.mxu0 %v1077_v1 }
 0x59d   :  { %v1057_v5 = vpop.f32.mrb[45].mxu1 }
 0x59e   :  { %v1783_v6 = vpop.f32.mrb[46].mxu1 }
 0x59f   :  { %v1079_v7 = vpack.c.bf16 %v1783_v6, %v1782_v4  ;;  %v1060_v15 = vpop.f32.mrb[47].mxu1  ;;  %1795 = vmatpush3.bf16.msra.mxu0 %v1077_v1 }
 0x5a0   :  { %v1078_v16 = vpack.c.bf16 %v1060_v15, %v1057_v5 }
 0x5a2   :  { %1796 = vmatprep.subr.bf16.mxu0 %v1078_v16 }
 0x5a3   :  { %1797 = vmatpush3.bf16.msra.mxu0 %v1078_v16 }
 0x5a4   :  { %1798 = vmatprep.subr.bf16.mxu0 %v1079_v7 }
 0x5a7   :  { %1799 = vmatpush3.bf16.msra.mxu0 %v1079_v7 }
 0x5a8   :  { %1942 = vmatprep.subr.bf16.mxu0 %v2001_v18 }
 0x5aa   :  { %1801 = vmatmul.mubr.bf16.vlgmr.msra.gmra.mrb[48].mxu0 %v2224_v8  ;;  %v1271_v8 = vld [vmem:[%s2400_s11] sm:$0xff] }
 0x5ab   :  { %1804 = vmatprep.mubr.bf16.mxu0 %v2229_v9  ;;  %v1272_v9 = vld [vmem:[%s2400_s11 + $0x8] sm:$0xff] }
 0x5b2   :  { %1805 = vmatmul.mubr.bf16.gmra.mrb[52].mxu0 %v2236_v10  ;;  %v1273_v10 = vld [vmem:[%s2400_s11 + $0x10] sm:$0xff] }
 0x5b3   :  { %1808 = vmatprep.mubr.bf16.mxu0 %v2241_v11  ;;  %v1943_v11 = vpack.c.bf16 %v1272_v9, %v1271_v8 }
 0x5b5   :  { %1944 = vmatpush3.bf16.msra.mxu0 %v1943_v11 }
 0x5b6   :  { %1945 = vmatprep.subr.bf16.mxu0 %v2001_v18 }
 0x5ba   :  { %1809 = vmatmul.mubr.bf16.gmra.mrb[56].mxu0 %v2248_v12  ;;  %v1274_v12 = vld [vmem:[%s2400_s11 + $0x18] sm:$0xff] }
 0x5bb   :  { %1812 = vmatprep.mubr.bf16.mxu0 %v2253_v13  ;;  %v1946_v13 = vpack.c.bf16 %v1274_v12, %v1273_v10 }
 0x5bd   :  { %1947 = vmatpush3.bf16.msra.mxu0 %v1946_v13 }
 0x5be   :  { %1948 = vmatprep.subr.bf16.mxu0 %v2001_v18 }
 0x5c2   :  { %1813 = vmatmul.mubr.bf16.gmra.mrb[60].mxu0 %v2260_v14  ;;  %v1275_v14 = vld [vmem:[%s2400_s11 + $0x20] sm:$0xff] }
 0x5c3   :  { %1883 = vmatprep.mubr.msk.f32.mxu0 %vm2002_vm0, %v2003_v19  ;;  %v1949_v17 = vpack.c.bf16 %v1276_v20, %v1275_v14 }
 0x5c5   :  { %1950 = vmatpush3.bf16.msra.mxu0 %v1949_v17 }
 0x5c6   :  { %1951 = vmatprep.subr.bf16.mxu0 %v2001_v18 }
 0x5c9   :  { %1953 = vmatpush3.bf16.msra.mxu0 %v1952_v23 }
 0x5ca   :  { %1954 = vmatprep.subr.bf16.mxu0 %v2001_v18 }
 0x5cd   :  { %1956 = vmatpush3.bf16.msra.mxu0 %v1955_v26 }
 0x5ce   :  { %1957 = vmatprep.subr.bf16.mxu0 %v2001_v18 }
 0x5d1   :  { %1959 = vmatpush3.bf16.msra.mxu0 %v1958_v29 }
 0x5d2   :  { %1960 = vmatprep.subr.bf16.mxu0 %v2001_v18 }
 0x5d5   :  { %1962 = vmatpush3.bf16.msra.mxu0 %v1961_v32 }
 0x5d6   :  { %1963 = vmatprep.subr.bf16.mxu0 %v2001_v18 }
 0x5d9   :  { %1965 = vmatpush3.bf16.msra.mxu0 %v1964_v35 }
 0x67d   :  { %v1802_v37 = vpop.f32.mrb[48].mxu0 }
 0x67e   :  { %v1130_v38 = vadd.f32 %v1802_v37, %v1404_v36  ;;  %v1121_v39 = vpop.f32.mrb[49].mxu0 }
 0x67f   :  { %v1122_v40 = vadd.f32 %v1404_v36, %v1121_v39  ;;  %v1803_v42 = vpop.f32.mrb[50].mxu0 }
 0x680   :  { %v1133_v43 = vadd.f32 %v1803_v42, %v1404_v36  ;;  %v1124_v44 = vpop.f32.mrb[51].mxu0  ;;  %v1186_v46 = vmax.f32 %v1130_v38, 0.0 }
 0x681   :  { %v1125_v45 = vadd.f32 %v1404_v36, %v1124_v44  ;;  %v1184_v48 = vmax.f32 %v1122_v40, 0.0 }
 0x682   :  { %v1187_v47 = vmax.f32 %v1133_v43, 0.0 }
 0x683   :  { %v1185_v49 = vmax.f32 %v1125_v45, 0.0 }
 0x684   :  { %v1922_v50 = vpack.c.bf16 %v1187_v47, %v1186_v46 }
 0x685   :  { %v1919_v52 = vpack.c.bf16 %v1185_v49, %v1184_v48  ;;  %v1806_v53 = vpop.f32.mrb[52].mxu0 }
 0x686   :  { %v1146_v54 = vadd.f32 %v1806_v53, %v1404_v36  ;;  %v1137_v41 = vpop.f32.mrb[53].mxu0 }
 0x687   :  { %v1138_v55 = vadd.f32 %v1404_v36, %v1137_v41  ;;  %v1807_v56 = vpop.f32.mrb[54].mxu0  ;;  %1920 = vmatpush3.bf16.msra.mxu1 %v1919_v52 }
 0x688   :  { %v1149_v57 = vadd.f32 %v1807_v56, %v1404_v36  ;;  %v1140_v58 = vpop.f32.mrb[55].mxu0  ;;  %1921 = vmatprep.subr.bf16.mxu1 %v2001_v18  ;;  %v1190_v59 = vmax.f32 %v1146_v54, 0.0 }
 0x689   :  { %v1141_v51 = vadd.f32 %v1404_v36, %v1140_v58  ;;  %v1188_v61 = vmax.f32 %v1138_v55, 0.0 }
 0x68a   :  { %v1191_v60 = vmax.f32 %v1149_v57, 0.0 }
 0x68b   :  { %v1189_v62 = vmax.f32 %v1141_v51, 0.0  ;;  %1923 = vmatpush3.bf16.msra.mxu1 %v1922_v50 }
 0x68c   :  { %v1928_v63 = vpack.c.bf16 %v1191_v60, %v1190_v59  ;;  %1924 = vmatprep.subr.bf16.mxu1 %v2001_v18 }
 0x68d   :  { %v1925_v0 = vpack.c.bf16 %v1189_v62, %v1188_v61  ;;  %v1810_v1 = vpop.f32.mrb[56].mxu0 }
 0x68e   :  { %v1162_v2 = vadd.f32 %v1810_v1, %v1404_v36  ;;  %v1153_v3 = vpop.f32.mrb[57].mxu0 }
 0x68f   :  { %v1154_v4 = vadd.f32 %v1404_v36, %v1153_v3  ;;  %v1811_v5 = vpop.f32.mrb[58].mxu0  ;;  %1926 = vmatpush3.bf16.msra.mxu1 %v1925_v0 }
 0x690   :  { %v1165_v6 = vadd.f32 %v1811_v5, %v1404_v36  ;;  %v1156_v7 = vpop.f32.mrb[59].mxu0  ;;  %1927 = vmatprep.subr.bf16.mxu1 %v2001_v18  ;;  %v1194_v16 = vmax.f32 %v1162_v2, 0.0 }
 0x691   :  { %v1157_v15 = vadd.f32 %v1404_v36, %v1156_v7  ;;  %v1192_v8 = vmax.f32 %v1154_v4, 0.0 }
 0x692   :  { %v1195_v19 = vmax.f32 %v1165_v6, 0.0 }
 0x693   :  { %v1193_v9 = vmax.f32 %v1157_v15, 0.0  ;;  %1929 = vmatpush3.bf16.msra.mxu1 %v1928_v63 }
 0x694   :  { %v1934_v10 = vpack.c.bf16 %v1195_v19, %v1194_v16  ;;  %1930 = vmatprep.subr.bf16.mxu1 %v2001_v18 }
 0x695   :  { %v1931_v11 = vpack.c.bf16 %v1193_v9, %v1192_v8  ;;  %v1814_v12 = vpop.f32.mrb[60].mxu0 }
 0x696   :  { %v1178_v13 = vadd.f32 %v1814_v12, %v1404_v36  ;;  %v1169_v14 = vpop.f32.mrb[61].mxu0 }
 0x697   :  { %v1170_v20 = vadd.f32 %v1404_v36, %v1169_v14  ;;  %v1815_v17 = vpop.f32.mrb[62].mxu0  ;;  %1932 = vmatpush3.bf16.msra.mxu1 %v1931_v11 }
 0x698   :  { %v1181_v21 = vadd.f32 %v1815_v17, %v1404_v36  ;;  %v1172_v22 = vpop.f32.mrb[63].mxu0  ;;  %1933 = vmatprep.subr.bf16.mxu1 %v2001_v18  ;;  %v1198_v24 = vmax.f32 %v1178_v13, 0.0 }
 0x699   :  { %v1173_v23 = vadd.f32 %v1404_v36, %v1172_v22  ;;  %v1196_v26 = vmax.f32 %v1170_v20, 0.0 }
 0x69a   :  { %v1199_v25 = vmax.f32 %v1181_v21, 0.0 }
 0x69b   :  { %v1197_v27 = vmax.f32 %v1173_v23, 0.0  ;;  %1935 = vmatpush3.bf16.msra.mxu1 %v1934_v10 }
 0x69c   :  { %v1940_v28 = vpack.c.bf16 %v1199_v25, %v1198_v24  ;;  %1936 = vmatprep.subr.bf16.mxu1 %v2001_v18 }
 0x69d   :  { %v1937_v29 = vpack.c.bf16 %v1197_v27, %v1196_v26 }
 0x69f   :  { %1938 = vmatpush3.bf16.msra.mxu1 %v1937_v29 }
 0x6a0   :  { %1939 = vmatprep.subr.bf16.mxu1 %v2001_v18 }
 0x6a3   :  { %1941 = vmatpush3.bf16.msra.mxu1 %v1940_v28 }
 0x6a6   :  { %1849 = vmatmul.mubr.f32.vlgmr.msra.gmra.mrb[48].mxu1 %v1200_v30 }
 0x779   :  { %v1267_v31 = vpop.f32.mrb[48].mxu1 }
 0x77a   :  { %v1850_v32 = vpop.f32.mrb[49].mxu1  ;;  %1884 = vmatmul.mubr.f32.vlgmr.msra.gmra.mrb[64].mxu0 %v1267_v31 }
 0x84d   :  { %v1360_v34 = vpop.f32.mrb[64].mxu0 }
 0x84e   :  { %v1361_v35 = vadd.f32 %v1405_v33, %v1360_v34  ;;  %v1885_v36 = vpop.f32.mrb[65].mxu0 }
 0x850   :  { %1364 = vst [vmem:[%s2404_s13] sm:$0xff] %v1361_v35 }

</bundles_post_ra>
